<compile_context>
chip_gen: v7x
topology: tpu7x:2x2x1
jax: 0.10.0
libtpu: 0.0.40
codegen_flags: <defaults>
</compile_context>

<pallas_src>
import jax
import jax.numpy as jnp
from jax.experimental import pallas as pl
from jax.experimental.pallas import tpu as pltpu


def _round_up(x, m):
    return ((x + m - 1) // m) * m


# ---------------------------------------------------------------------------
# Kernel: one row tile of   label_score = relu(x @ W1^T + b1) @ W2^T + b2
# ---------------------------------------------------------------------------
def label_ffn_kernel(x_ref, w1_ref, b1_ref, w2_ref, b2_ref, o_ref):
    # x_ref : (TN, D)      span rows, f32 (cast to bf16 in-kernel for the MXU)
    # w1_ref: (D, H_pad)   linear1.weight^T, bf16, hidden axis zero-padded to 128
    # b1_ref: (1, H_pad)   linear1.bias, f32, zero-padded
    # w2_ref: (H_pad, L)   linear2.weight^T, bf16, padded hidden rows are zero
    # b2_ref: (1, L)       linear2.bias, f32
    # o_ref : (TN, L)      label scores, f32
    x = x_ref[...].astype(w1_ref.dtype)                      # f32 -> bf16 (MXU path)
    h = jnp.dot(x, w1_ref[...], preferred_element_type=jnp.float32)
    h = jnp.maximum(h + b1_ref[...], 0.0)                    # f32 epilogue (v5e VPU)
    out = jnp.dot(h.astype(w2_ref.dtype), w2_ref[...],
                  preferred_element_type=jnp.float32)
    o_ref[...] = (out + b2_ref[...]).astype(o_ref.dtype)


# ---------------------------------------------------------------------------
# One-time parameter preparation (hoisted out of the per-call path).
# ---------------------------------------------------------------------------
def prepare_label_ffn_params(w1_t, b1, w2_t, b2, compute_dtype=jnp.bfloat16):
    """Pad + cast the Feedforward parameters once; reuse for every forward call.

    w1_t : (D, H) = linear1.weight.T      b1 : (H,)
    w2_t : (H, L) = linear2.weight.T      b2 : (L,)
    Zero-padding the hidden axis to a multiple of 128 is exact: padded hidden
    units see relu(0 + 0) = 0 and meet zero rows of W2.
    """
    D, H = w1_t.shape
    L = w2_t.shape[1]
    H_pad = _round_up(H, 128)
    w1_p = jnp.zeros((D, H_pad), compute_dtype).at[:, :H].set(
        w1_t.astype(compute_dtype))
    b1_p = jnp.zeros((1, H_pad), jnp.float32).at[0, :H].set(
        b1.astype(jnp.float32))
    w2_p = jnp.zeros((H_pad, L), compute_dtype).at[:H, :].set(
        w2_t.astype(compute_dtype))
    b2_p = b2.astype(jnp.float32).reshape(1, L)
    return {"w1": w1_p, "b1": b1_p, "w2": w2_p, "b2": b2_p, "hidden_dim": H}


def _vmem_budget_bytes():
    # ~half of physical VMEM: 64 MiB on v5e/v6e (128 MiB phys), 32 MiB on v7x
    # (64 MiB phys).  Fallback is conservative if the query is unavailable.
    try:
        cap = int(getattr(pltpu.get_tpu_info(), "vmem_capacity_bytes"))
    except Exception:
        cap = 64 * 1024 * 1024
    return min(cap // 2, 64 * 1024 * 1024)


def _choose_row_tile(N, D, H_pad, L, tn_target, vmem_budget):
    """Balanced row tiles: <8 rows of residual padding per tile, >=2 tiles when
    N allows (so v7x's two TensorCores both get work), capped by the VMEM
    footprint of one double-buffered grid step."""
    bytes_per_row = (2 * D * 4          # f32 span tile, double-buffered
                     + 2 * L * 4        # f32 output tile, double-buffered
                     + D * 2            # bf16 copy of x
                     + H_pad * 4        # f32 hidden intermediate
                     + H_pad * 2        # bf16 copy of hidden
                     + L * 4)           # f32 pre-store temp
    weight_bytes = 2 * ((D + L) * H_pad * 2 + (H_pad + L) * 4)  # dbl-buffered
    budget = max(vmem_budget - weight_bytes - (2 << 20), 8 * bytes_per_row)
    tn_cap = max(8, (budget // bytes_per_row) // 8 * 8)

    num_tiles = max(pl.cdiv(N, tn_target), 2 if N >= 16 else 1)
    tn = _round_up(pl.cdiv(N, num_tiles), 8)
    tn = min(tn, tn_cap, _round_up(N, 8))
    return max(tn, 8)


# ---------------------------------------------------------------------------
# Forward wrapper
# ---------------------------------------------------------------------------
def chart_span_parser_forward(span, params, *, tn_target=1024):
    """label_score = relu(span @ W1^T + b1) @ W2^T + b2   (norm=False, drop=0).

    span   : (N, D) f32 span representations
    params : dict from prepare_label_ffn_params (padded/cast once)
    returns (N, L) label scores in span.dtype.
    """
    N, D = span.shape
    w1_p, b1_p, w2_p, b2_p = params["w1"], params["b1"], params["w2"], params["b2"]
    H_pad = w1_p.shape[1]
    H = int(params.get("hidden_dim", H_pad))
    L = w2_p.shape[1]
    assert w1_p.shape[0] == D, "span feature dim must match prepared W1"

    vmem_budget = _vmem_budget_bytes()
    TN = _choose_row_tile(N, D, H_pad, L, tn_target, vmem_budget)
    grid = (pl.cdiv(N, TN),)

    itm_w = jnp.dtype(w1_p.dtype).itemsize
    cost = pl.CostEstimate(
        flops=2 * N * D * H + 2 * N * H * L,          # true, unpadded FLOPs
        transcendentals=0,
        bytes_accessed=(N * D * span.dtype.itemsize   # span read (f32, unpadded)
                        + D * H_pad * itm_w           # W1
                        + H_pad * L * itm_w           # W2
                        + (H_pad + L) * 4             # biases
                        + N * L * 4))                 # output write (unpadded)

    return pl.pallas_call(
        label_ffn_kernel,
        out_shape=jax.ShapeDtypeStruct((N, L), span.dtype),
        grid=grid,
        in_specs=[
            # activations: row-tiled, f32, unpadded -- no host-side pre-pass.
            # (block last dim == full array dim D is legal even if D % 128 != 0)
            pl.BlockSpec((TN, D), lambda i: (i, 0)),
            # parameters: constant index_map -> stay VMEM-resident across steps
            pl.BlockSpec((D, H_pad), lambda i: (0, 0)),
            pl.BlockSpec((1, H_pad), lambda i: (0, 0)),
            pl.BlockSpec((H_pad, L), lambda i: (0, 0)),
            pl.BlockSpec((1, L), lambda i: (0, 0)),
        ],
        # unpadded output: no 8x-padded f32 writeback, no post-call slice
        out_specs=pl.BlockSpec((TN, L), lambda i: (i, 0)),
        compiler_params=pltpu.CompilerParams(
            dimension_semantics=("parallel",),   # megacore-shard row tiles (v7x)
            vmem_limit_bytes=vmem_budget,
        ),
        cost_estimate=cost,
    )(span, w1_p, b1_p, w2_p, b2_p)


# ---------------------------------------------------------------------------
# Test harness
# ---------------------------------------------------------------------------
def orthogonal_init(key, rows, cols, dtype=jnp.float32):
    """Deterministic orthogonal init mimicking torch.nn.init.orthogonal_."""
    n = max(rows, cols)
    a = jax.random.normal(key, (n, n), dtype=jnp.float32)
    q, r = jnp.linalg.qr(a)
    d = jnp.diag(r)
    q = q * jnp.where(d >= 0, 1.0, -1.0)     # sign fix; robust to zero diagonal
    return q[:rows, :cols].astype(dtype)


def reference_forward_f32(span, w1_t, b1, w2_t, b2):
    h = jnp.maximum(span @ w1_t + b1, 0.0)
    return h @ w2_t + b2


def reference_forward_bf16(span, w1_t, b1, w2_t, b2, compute_dtype=jnp.bfloat16):
    """Same numerics as the kernel (bf16 MXU inputs, f32 accumulation)."""
    x = span.astype(compute_dtype)
    h = jnp.dot(x, w1_t.astype(compute_dtype),
                preferred_element_type=jnp.float32) + b1
    h = jnp.maximum(h, 0.0)
    out = jnp.dot(h.astype(compute_dtype), w2_t.astype(compute_dtype),
                  preferred_element_type=jnp.float32) + b2
    return out


if __name__ == "__main__":
    # Small deterministic example consistent with the module:
    #   sen_len = 8  ->  num_spans = (1+8)*8//2 = 36
    #   lstm_dim = 32, label_hidden_dim = 32, vocab.num_parse_label = 16
    sen_len = 8
    num_spans = (1 + sen_len) * sen_len // 2          # 36
    lstm_dim = 32
    label_hidden_dim = 32
    num_parse_label = 16

    key = jax.random.PRNGKey(0)
    k_span, k_w1, k_b1, k_w2, k_b2 = jax.random.split(key, 5)

    span = jax.random.normal(k_span, (num_spans, lstm_dim), dtype=jnp.float32)

    # linear1.weight: (H, D) orthogonal; stored transposed as (D, H)
    w1 = orthogonal_init(k_w1, label_hidden_dim, lstm_dim)
    w1_t = w1.T
    b1 = (jax.random.uniform(k_b1, (label_hidden_dim,), dtype=jnp.float32)
          - 0.5) * (2.0 / jnp.sqrt(lstm_dim))
    # linear2.weight: (L, H) orthogonal; stored transposed as (H, L)
    w2 = orthogonal_init(k_w2, num_parse_label, label_hidden_dim)
    w2_t = w2.T
    b2 = (jax.random.uniform(k_b2, (num_parse_label,), dtype=jnp.float32)
          - 0.5) * (2.0 / jnp.sqrt(label_hidden_dim))

    # One-time parameter preparation (hoisted out of the per-call path).
    params = prepare_label_ffn_params(w1_t, b1, w2_t, b2)

    out = chart_span_parser_forward(span, params)
    out = jax.block_until_ready(out)

    assert out.shape == (num_spans, num_parse_label)
    assert out.dtype == span.dtype

    # Tight check against a reference with the same bf16-input / f32-accumulate
    # numerics, plus a looser sanity check against the pure-f32 reference.
    ref_bf16 = reference_forward_bf16(span, w1_t, b1, w2_t, b2)
    ref_f32 = reference_forward_f32(span, w1_t, b1, w2_t, b2)
    assert jnp.allclose(out, ref_bf16, atol=1e-3, rtol=1e-3), \
        float(jnp.max(jnp.abs(out - ref_bf16)))
    assert jnp.allclose(out, ref_f32, atol=5e-2, rtol=5e-2), \
        float(jnp.max(jnp.abs(out - ref_f32)))

    print("KERNEL_OK")
</pallas_src>

<mosaic_0001>
module attributes {stable_mosaic.version = 11 : i64} {
  func.func @label_ffn_kernel(%arg0: i32, %arg1: memref<24x32xf32, #tpu.memory_space<vmem>>, %arg2: memref<32x128xbf16, #tpu.memory_space<vmem>>, %arg3: memref<1x128xf32, #tpu.memory_space<vmem>>, %arg4: memref<128x16xbf16, #tpu.memory_space<vmem>>, %arg5: memref<1x16xf32, #tpu.memory_space<vmem>>, %arg6: memref<24x16xf32, #tpu.memory_space<vmem>>) attributes {dimension_semantics = [#tpu.dimension_semantics<parallel>], iteration_bounds = array<i64: 2>, scalar_prefetch = 0 : i64, scratch_operands = 0 : i64, tpu.core_type = #tpu.core_type<tc>, window_params = [{transform_indices = @transform_0, window_bounds = array<i64: 24, 32>}, {pipeline_mode = #tpu.pipeline_mode<synchronous>, transform_indices = @transform_1, window_bounds = array<i64: 32, 128>}, {pipeline_mode = #tpu.pipeline_mode<synchronous>, transform_indices = @transform_2, window_bounds = array<i64: 1, 128>}, {pipeline_mode = #tpu.pipeline_mode<synchronous>, transform_indices = @transform_3, window_bounds = array<i64: 128, 16>}, {pipeline_mode = #tpu.pipeline_mode<synchronous>, transform_indices = @transform_4, window_bounds = array<i64: 1, 16>}, {transform_indices = @transform_5, window_bounds = array<i64: 24, 16>}]} {
    %c0 = arith.constant 0 : index
    %c0_0 = arith.constant 0 : index
    %0 = vector.load %arg1[%c0, %c0_0] : memref<24x32xf32, #tpu.memory_space<vmem>>, vector<24x32xf32>
    %1 = arith.truncf %0 : vector<24x32xf32> to vector<24x32xbf16>
    %c0_1 = arith.constant 0 : index
    %c0_2 = arith.constant 0 : index
    %2 = vector.load %arg2[%c0_1, %c0_2] : memref<32x128xbf16, #tpu.memory_space<vmem>>, vector<32x128xbf16>
    %cst = arith.constant dense<0.000000e+00> : vector<24x128xf32>
    %3 = tpu.matmul %1, %2, %cst {dimension_numbers = #tpu.dot_dimension_numbers<[1], [0], [0], [1], [0, 0, 1, 1], [], []>} : vector<24x32xbf16>, vector<32x128xbf16>, vector<24x128xf32> -> vector<24x128xf32>
    %c0_3 = arith.constant 0 : index
    %c0_4 = arith.constant 0 : index
    %4 = vector.load %arg3[%c0_3, %c0_4] : memref<1x128xf32, #tpu.memory_space<vmem>>, vector<1x128xf32>
    %5 = vector.broadcast %4 : vector<1x128xf32> to vector<24x128xf32>
    %6 = arith.addf %3, %5 : vector<24x128xf32>
    %cst_5 = arith.constant 0.000000e+00 : f32
    %7 = vector.broadcast %cst_5 : f32 to vector<24x128xf32>
    %8 = arith.maximumf %6, %7 : vector<24x128xf32>
    %9 = arith.truncf %8 : vector<24x128xf32> to vector<24x128xbf16>
    %c0_6 = arith.constant 0 : index
    %c0_7 = arith.constant 0 : index
    %10 = vector.load %arg4[%c0_6, %c0_7] : memref<128x16xbf16, #tpu.memory_space<vmem>>, vector<128x16xbf16>
    %cst_8 = arith.constant dense<0.000000e+00> : vector<24x16xf32>
    %11 = tpu.matmul %9, %10, %cst_8 {dimension_numbers = #tpu.dot_dimension_numbers<[1], [0], [0], [1], [0, 0, 1, 1], [], []>} : vector<24x128xbf16>, vector<128x16xbf16>, vector<24x16xf32> -> vector<24x16xf32>
    %c0_9 = arith.constant 0 : index
    %c0_10 = arith.constant 0 : index
    %12 = vector.load %arg5[%c0_9, %c0_10] : memref<1x16xf32, #tpu.memory_space<vmem>>, vector<1x16xf32>
    %13 = vector.broadcast %12 : vector<1x16xf32> to vector<24x16xf32>
    %14 = arith.addf %11, %13 : vector<24x16xf32>
    %c0_11 = arith.constant 0 : index
    %c0_12 = arith.constant 0 : index
    %15 = vector.load %arg6[%c0_11, %c0_12] : memref<24x16xf32, #tpu.memory_space<vmem>>, vector<24x16xf32>
    tpu.vector_store %arg6[%c0_11, %c0_12], %14 {strides = array<i32>} : memref<24x16xf32, #tpu.memory_space<vmem>>, vector<24x16xf32>,
    return
  }
  func.func @transform_0(%arg0: i32) -> (i32, i32) {
    %c0_i32 = arith.constant 0 : i32
    %c0_i32_0 = arith.constant 0 : i32
    return %arg0, %c0_i32 : i32, i32
  }
  func.func @transform_1(%arg0: i32) -> (i32, i32) {
    %c0_i32 = arith.constant 0 : i32
    %c0_i32_0 = arith.constant 0 : i32
    %c0_i32_1 = arith.constant 0 : i32
    return %c0_i32, %c0_i32_0 : i32, i32
  }
  func.func @transform_2(%arg0: i32) -> (i32, i32) {
    %c0_i32 = arith.constant 0 : i32
    %c0_i32_0 = arith.constant 0 : i32
    %c0_i32_1 = arith.constant 0 : i32
    return %c0_i32, %c0_i32_0 : i32, i32
  }
  func.func @transform_3(%arg0: i32) -> (i32, i32) {
    %c0_i32 = arith.constant 0 : i32
    %c0_i32_0 = arith.constant 0 : i32
    %c0_i32_1 = arith.constant 0 : i32
    return %c0_i32, %c0_i32_0 : i32, i32
  }
  func.func @transform_4(%arg0: i32) -> (i32, i32) {
    %c0_i32 = arith.constant 0 : i32
    %c0_i32_0 = arith.constant 0 : i32
    %c0_i32_1 = arith.constant 0 : i32
    return %c0_i32, %c0_i32_0 : i32, i32
  }
  func.func @transform_5(%arg0: i32) -> (i32, i32) {
    %c0_i32 = arith.constant 0 : i32
    %c0_i32_0 = arith.constant 0 : i32
    return %arg0, %c0_i32 : i32, i32
  }
}

</mosaic_0001>

<bundles_post_ra>
// kernel: tpu_custom_call.1
= control target key start
LH: loop header
LB: loop body
LE: loop exit
PB: predicated region body
PF: predicated region fallthrough
CT: control target
= control target key end

     0   :  { %s979_s18 = smov 0   ;;  %s981_s19 = smov 0   ;;  %s1094_s0 = inlined_call_operand.vmem [shape: f32[36,32], index: 0, kind: input, shape index: {}]   ;;  %s1095_s1 = inlined_call_operand.vmem [shape: bf16[32,128], index: 1, kind: input, shape index: {}]   ;;  %s1096_s2 = inlined_call_operand.vmem [shape: f32[1,128], index: 2, kind: input, shape index: {}]   ;;  %s1097_s3 = inlined_call_operand.vmem [shape: bf16[128,16], index: 3, kind: input, shape index: {}]   ;;  %s1098_s4 = inlined_call_operand.vmem [shape: f32[1,16], index: 4, kind: input, shape index: {}]   ;;  %s1099_s5 = inlined_call_operand.vmem [shape: f32[36,16], index: 5, kind: output, shape index: {}]  }
   0x1   :  { %s983_s20 = smov 0  }
   0x2 LB: > { %s992_s21 = sadd.s32 4294967295, %s915_s20   ;;  %s994_s22 = sadd.s32 1, %s915_s20   ;;  %s915_s20 = sphi %s983_s20, %s1103_s20   ;;  %s911_s19 = sphi %s981_s19, %s1102_s19   ;;  %s907_s18 = sphi %s979_s18, %s1101_s18  }
   0x3   : > { %s129_s23 = ssub.s32 %s915_s20, %s994_s22  ;;  %s132_s24 = sadd.s32 1, %s911_s19 }
   0x4   : > { %p130_p0 = scmp.eq.s32.totalorder %s129_s23, 0  ;;  %p142_p1 = scmp.ne.s32.totalorder %s911_s19, %s907_s18 }
   0x5   : > { %p143_p2 = scmp.eq.s32.totalorder %s992_s21, 1  ;;  %p686_p3 = scmp.ge.s32.totalorder %s915_s20, 1 }
   0x6   : > { %s1002_s25 = scalar_select %p130_p0, %s911_s19, %s132_s24  }
   0x7   : > { %p1004_p4 = por %p143_p2, %p142_p1  ;;  %p196_p5 = scmp.lt.s32.totalorder %s915_s20, 3 }
   0x9   : > { %p197_p6 = pnand %p686_p3, %p196_p5 }
   0xa   : > { %v847_v0 = vld [vmem:[%s1095_s1] sm:$0xff] (!%p197_p6)   ;;  %s1012_s29 = smul.u32 (!%p197_p6), 3, %s992_s21  ;;  %v848_v1 = vld [vmem:[%s1095_s1 + $0x8] sm:$0xff] (!%p197_p6)   ;;  %v851_v4 = vld [vmem:[%s1097_s3 + $0x10] sm:$0xff] (!%p197_p6)   ;;  %vm275_vm0 = vcmask (!%p197_p6), 261120   ;;  %vm454_vm1 = vcmask (!%p197_p6), 130048  }
   0xb   : > { %200 = sbr.rel (%p197_p6) target bundleno = 527 (0x20f), region = 40  ;;  %729 = vmatprep.subr.bf16.mxu0 (!%p197_p6), %v847_v0  ;;  %v849_v2 = vld [vmem:[%s1097_s3] sm:$0xff] (!%p197_p6)   ;;  %v850_v3 = vld [vmem:[%s1097_s3 + $0x8] sm:$0xff] (!%p197_p6)   ;;  %v852_v10 = vld [vmem:[%s1097_s3 + $0x18] sm:$0xff] (!%p197_p6)  }
   0xc   : > { %p232_p7 = scmp.lt.s32.totalorder (!%p197_p6), %s1012_s29, 4  ;;  %730 = vmatpush3.bf16.msra.mxu0 (!%p197_p6), %v847_v0  ;;  %737 = vmatprep.subr.bf16.mxu1 (!%p197_p6), %v849_v2  ;;  %v853_v11 = vld [vmem:[%s1097_s3 + $0x20] sm:$0xff] (!%p197_p6)   ;;  %v854_v12 = vld [vmem:[%s1097_s3 + $0x28] sm:$0xff] (!%p197_p6)   ;;  %v855_v13 = vld [vmem:[%s1097_s3 + $0x30] sm:$0xff] (!%p197_p6)  }
   0xd   : > { %731 = vmatprep.subr.bf16.mxu0 (!%p197_p6), %v848_v1  ;;  %738 = vmatpush3.bf16.msra.mxu1 (!%p197_p6), %v849_v2  ;;  %v856_v14 = vld [vmem:[%s1097_s3 + $0x38] sm:$0xff] (!%p197_p6)   ;;  %v688_v15 = vld [vmem:[%s1096_s2] ss:$0 sm:$0xff] (!%p197_p6) }
   0xe   : > { %739 = vmatprep.subr.bf16.mxu1 (!%p197_p6), %v850_v3  ;;  %v693_v28 = vld [vmem:[%s1098_s4] ss:$0 sm:$0xff] (!%p197_p6) }
  0x10   : > { %732 = vmatpush3.bf16.msra.mxu0 (!%p197_p6), %v848_v1 }
  0x11   : > { %740 = vmatpush3.bf16.msra.mxu1 (!%p197_p6), %v850_v3 }
  0x12   : > { %s233_s11 = scalar_select %p232_p7, %s1012_s29, 4  ;;  %741 = vmatprep.subr.bf16.mxu1 %v851_v4 }
  0x14   : > { %s687_s12 = sshll.u32 %s233_s11, 3 }
  0x15   : > { %s235_s17 = scalar_lea.vmem %s1094_s0, %s687_s12  ;;  %742 = vmatpush3.bf16.msra.mxu1 %v851_v4  ;;  %s224_s12 = sand.u32 1, %s907_s18  }
  0x16   : > { %v247_v5 = vld [vmem:[%s235_s17] sm:$0xff]  ;;  %v248_v6 = vld [vmem:[%s235_s17 + $0x8] sm:$0xff]  ;;  %v249_v7 = vld [vmem:[%s235_s17 + $0x10] sm:$0xff]  ;;  %743 = vmatprep.subr.bf16.mxu1 %v852_v10  ;;  %s757_s13 = smul.u32 24, %s224_s12  ;;  %s466_s18 = ssub.s32 (%p1004_p4), 5, %s1012_s29 }
  0x17   : > { %v250_v8 = vpack.c.bf16 %v248_v6, %v247_v5  ;;  %v251_v9 = vpack.c.bf16 %v249_v7, %v249_v7  ;;  %s714_s17 = smul.u32 (%p1004_p4), 24, %s992_s21  ;;  %p467_p8 = scmp.lt.s32.totalorder (%p1004_p4), %s466_s18, 3 }
  0x18   : > { %s1053_s16 = scalar_lea.vmem [#allocation2], %s757_s13  }
  0x19   : > { %733 = vmatprep.mubr.msk.bf16.mxu0 %vm275_vm0, %v250_v8  ;;  %744 = vmatpush3.bf16.msra.mxu1 %v852_v10  ;;  %s1065_s24 = scalar_lea.vmem (%p1004_p4), %s1099_s5, %s714_s17  }
  0x1a   : > { %734 = vmatmul.mubr.msk.bf16.vlgmr.msra.gmra.mrb[0].mxu0 %vm275_vm0, %v251_v9  ;;  %745 = vmatprep.subr.bf16.mxu1 %v853_v11 }
  0x1d   : > { %746 = vmatpush3.bf16.msra.mxu1 %v853_v11 }
  0x1e   : > { %747 = vmatprep.subr.bf16.mxu1 %v854_v12 }
  0x21   : > { %748 = vmatpush3.bf16.msra.mxu1 %v854_v12 }
  0x22   : > { %749 = vmatprep.subr.bf16.mxu1 %v855_v13 }
  0x25   : > { %750 = vmatpush3.bf16.msra.mxu1 %v855_v13 }
  0x26   : > { %751 = vmatprep.subr.bf16.mxu1 %v856_v14 }
  0x29   : > { %752 = vmatpush3.bf16.msra.mxu1 %v856_v14 }
  0xed   : > { %v735_v16 = vpop.f32.mrb[0].mxu0 }
  0xee   : > { %v325_v17 = vadd.f32 %v735_v16, %v688_v15  ;;  %v316_v18 = vpop.f32.mrb[1].mxu0 }
  0xef   : > { %v317_v19 = vadd.f32 %v688_v15, %v316_v18  ;;  %v736_v20 = vpop.f32.mrb[2].mxu0 }
  0xf0   : > { %v319_v21 = vpop.f32.mrb[3].mxu0  ;;  %v332_v23 = vmax.f32 %v325_v17, 0.0 }
  0xf1   : > { %v320_v22 = vadd.f32 %v688_v15, %v319_v21  ;;  %v330_v24 = vmax.f32 %v317_v19, 0.0 }
  0xf2   : > { %v334_v27 = vpack.c.bf16 %v332_v23, %v332_v23 }
  0xf3   : > { %v331_v25 = vmax.f32 %v320_v22, 0.0 }
  0xf5   : > { %v333_v26 = vpack.c.bf16 %v331_v25, %v330_v24 }
  0xf7   : > { %753 = vmatprep.mubr.bf16.mxu1 %v333_v26 }
  0xf8   : > { %754 = vmatmul.mubr.bf16.vlgmr.msra.gmra.mrb[0].mxu1 %v334_v27 }
 0x1cb   : > { %v755_v29 = vpop.f32.mrb[0].mxu1  ;;  %464 = sbr.rel (!%p1004_p4) target bundleno = 527 (0x20f), region = 44 }
 0x1cc   : > { %v449_v30 = vadd.f32 %v755_v29, %v693_v28  ;;  %v440_v31 = vpop.f32.mrb[1].mxu1 }
 0x1cd   : > { %v441_v32 = vadd.f32 %v693_v28, %v440_v31  ;;  %v756_v33 = vpop.f32.mrb[2].mxu1 }
 0x1ce   : > { %457 = vst.msk [vmem:[%s1053_s16 + $0x10] sm:$0xff] %vm454_vm1, %v449_v30  ;;  %v443_v34 = vpop.f32.mrb[3].mxu1 }
 0x1cf   : > { %455 = vst.msk [vmem:[%s1053_s16] sm:$0xff] %vm454_vm1, %v441_v32  ;;  %v444_v35 = vadd.f32 %v693_v28, %v443_v34 }
 0x1d1   : > { %456 = vst.msk [vmem:[%s1053_s16 + $0x8] sm:$0xff] %vm454_vm1, %v444_v35 }
 0x1d2   : > { %s1105_s18 = smov (!%p467_p8, %s466_s18), 3 }
 0x1d3   : > { %s702_s27 = sshll.u32 %s1105_s18, 7 }
 0x1d4   : > { %p705_p9 = scmp.eq.s32.totalorder %s702_s27, 0 }
 0x1d5   : > { %857 = sdivrem.u32 (!%p705_p9), %s1105_s18, 3 }
 0x1d6   : > { %475 = sbr.rel (%p705_p9) target bundleno = 527 (0x20f), region = 48 }
 0x1de   : > { %s1071_s26 = spop.drf %857 }
 0x1df   : > { %p706_p10 = scmp.le.s32.totalorder %s1071_s26, 0 }
 0x1e0   : > { %s917_s21 = smov (!%p706_p10), %s1065_s24   ;;  %s921_s29 = smov (!%p706_p10), %s1053_s16  }
 0x1e1   : > { %639 = sbr.rel (%p706_p10) target bundleno = 498 (0x1f2), region = 124  ;;  %s925_s28 = smov (!%p706_p10), 0  }
 0x1e2   : > { %s929_s30 = smov (!%p706_p10), 0  }
 0x1e8 LB: >> { %v543_v36 = vld [vmem:[%s923_s29] sm:$0xff]  ;;  %v545_v37 = vld [vmem:[%s923_s29 + $0x8] sm:$0xff]  ;;  %v547_v38 = vld [vmem:[%s923_s29 + $0x10] sm:$0xff]  ;;  %s549_s6 = sadd.s32 1, %s927_s28  ;;  %s537_s30 = sadd.s32 1, %s931_s30   ;;  %s931_s30 = sphi %s929_s30, %s537_s30   ;;  %s927_s28 = sphi %s925_s28, %s926_s28   ;;  %s923_s29 = sphi %s921_s29, %s554_s29   ;;  %s919_s21 = sphi %s917_s21, %s555_s21  }
 0x1e9   : >> { %544 = vst [vmem:[%s919_s21] sm:$0xff] %v543_v36  ;;  %546 = vst [vmem:[%s919_s21 + $0x8] sm:$0xff] %v545_v37  ;;  %p550_p11 = scmp.ge.s32.totalorder %s549_s6, %s1071_s26  ;;  %p536_p12 = scmp.ge.s32.totalorder %s537_s30, %s1071_s26 }
 0x1ea   : >> { %548 = vst [vmem:[%s919_s21 + $0x10] sm:$0xff] %v547_v38 }
 0x1eb   : >> { %s1107_s6 = smov (%p550_p11, %s549_s6), 0  ;;  %539 = sbr.rel (!%p536_p12) target bundleno = 488 (0x1e8), region = 130 }
 0x1ec   : >> { %s552_s7 = smul.u32 24, %s1107_s6  ;;  %s926_s28 = smov %s1107_s6  }
 0x1ee   : >> { %s554_s29 = scalar_lea.vmem %s1053_s16, %s552_s7 [#allocation2]   ;;  %s555_s21 = scalar_lea.vmem %s1065_s24, %s552_s7  }
 0x1f2 PF: > { %859 = sdivrem.u32 %s1105_s18, 3 }
 0x1f3   : > { %s707_s8 = smul.u32 24, %s1071_s26 }
 0x1f5   : > { %s560_s9 = scalar_lea.vmem %s1053_s16, %s707_s8 [#allocation2]   ;;  %s562_s10 = scalar_lea.vmem %s1065_s24, %s707_s8  }
 0x1fb   : > { %s860_s11 = spop.drf %859 }
 0x1fc   : > { %p709_p13 = scmp.le.s32.totalorder %s860_s11, 0 }
 0x1fd   : > { %s933_s12 = smov (!%p709_p13), %s562_s10   ;;  %s937_s13 = smov (!%p709_p13), %s560_s9  }
 0x1fe   : > { %653 = sbr.rel (%p709_p13) target bundleno = 527 (0x20f), region = 135  ;;  %s941_s14 = smov (!%p709_p13), 0  }
 0x1ff   : > { %s945_s15 = smov (!%p709_p13), 0  }
 0x205 LB: >> { %v572_v39 = vld [vmem:[%s939_s13] sm:$0xff]  ;;  %s574_s17 = sadd.s32 1, %s943_s14  ;;  %s566_s15 = sadd.s32 1, %s947_s15   ;;  %s947_s15 = sphi %s945_s15, %s566_s15   ;;  %s943_s14 = sphi %s941_s14, %s942_s14   ;;  %s939_s13 = sphi %s937_s13, %s579_s13   ;;  %s935_s12 = sphi %s933_s12, %s580_s12  }
 0x206   : >> { %573 = vst [vmem:[%s935_s12] sm:$0xff] %v572_v39  ;;  %p575_p0 = scmp.ge.s32.totalorder %s574_s17, %s860_s11  ;;  %p565_p1 = scmp.ge.s32.totalorder %s566_s15, %s860_s11 }
 0x208   : >> { %s1109_s17 = smov (%p575_p0, %s574_s17), 0  ;;  %568 = sbr.rel (!%p565_p1) target bundleno = 517 (0x205), region = 141 }
 0x209   : >> { %s710_s16 = sshll.u32 %s1109_s17, 3  ;;  %s942_s14 = smov %s1109_s17  }
 0x20a   : >> { %s579_s13 = scalar_lea.vmem %s560_s9, %s710_s16 [#allocation2]   ;;  %s580_s12 = scalar_lea.vmem %s562_s10, %s710_s16  }
 0x20f PF: > { %p12_p2 = scmp.ge.s32.totalorder %s994_s22, 4   ;;  %s1101_s18 = smov %s911_s19 }
 0x210   : > { %s1102_s19 = smov %s1002_s25  ;;  %s1103_s20 = smov %s994_s22 }
 0x211   :  { %14 = sbr.rel (!%p12_p2) target bundleno = 2 (0x2), region = 152 }

</bundles_post_ra>
